<compile_context>
chip_gen: v7x
topology: tpu7x:2x2x1
jax: 0.10.0
libtpu: 0.0.40
codegen_flags: <defaults>
</compile_context>

<pallas_src>
import jax
import jax.numpy as jnp
from jax.experimental import pallas as pl
from jax.experimental.pallas import tpu as pltpu


def _round_up(x, m):
    return ((x + m - 1) // m) * m


def _mlp_kernel(x_ref, w1_ref, b1_ref, w2_ref, b2_ref, w3_ref, b3_ref, o_ref):
    # Layer 1: Linear + Sigmoid (matmul operands may be bf16; accum is f32)
    h = jnp.dot(x_ref[...], w1_ref[...], preferred_element_type=jnp.float32)
    h = jax.nn.sigmoid(h + b1_ref[...])
    # Layer 2: Linear + Sigmoid
    h = jnp.dot(h.astype(w2_ref.dtype), w2_ref[...],
                preferred_element_type=jnp.float32)
    h = jax.nn.sigmoid(h + b2_ref[...])
    # Final layer: Linear (no activation, matches MLP's final nn.Linear)
    out = jnp.dot(h.astype(w3_ref.dtype), w3_ref[...],
                  preferred_element_type=jnp.float32)
    o_ref[...] = (out + b3_ref[...]).astype(o_ref.dtype)


def r_encoder_forward(x, params, *, max_batch_tile=512,
                      matmul_dtype=jnp.bfloat16):
    """Pallas forward pass of REncoder (MLP with sigmoid activations).

    x:      (N, input_dim) float32
    params: dict with w1 (D_in,H1), b1 (1,H1), w2 (H1,H2), b2 (1,H2),
            w3 (H2,D_out), b3 (1,D_out)   (all float32)
    matmul_dtype: dtype used for matmul operands (bf16 default for MXU
            throughput; pass jnp.float32 for exact full-precision parity).
    """
    n, d_in = x.shape
    w1, b1 = params["w1"], params["b1"]
    w2, b2 = params["w2"], params["b2"]
    w3, b3 = params["w3"], params["b3"]
    h1 = w1.shape[1]
    h2 = w2.shape[1]
    d_out = w3.shape[1]

    # --- lane-dense output: pad final layer's output columns to 128-multiple
    # so output stores are unmasked full-lane vst's. Extra columns are zero
    # and sliced off below.
    d_out_pad = _round_up(d_out, 128)
    if d_out_pad != d_out:
        w3 = jnp.pad(w3, ((0, 0), (0, d_out_pad - d_out)))
        b3 = jnp.pad(b3, ((0, 0), (0, d_out_pad - d_out)))

    # --- batch tiling: single big tile (grid=(1,)) for small N; cap at
    # max_batch_tile rows so very large N still pipelines and shards across
    # TensorCores (dimension_semantics="parallel").
    if n <= max_batch_tile:
        tb = _round_up(n, 8)
    else:
        tb = _round_up(max_batch_tile, 8)
    n_pad = _round_up(n, tb)
    if n_pad != n:
        x = jnp.pad(x, ((0, n_pad - n), (0, 0)))

    # --- cast matmul operands in the wrapper (halves x/weight DMA bytes).
    # Biases stay f32; accumulation / bias-add / sigmoid are f32 in-kernel.
    x_c = x.astype(matmul_dtype)
    w1_c = w1.astype(matmul_dtype)
    w2_c = w2.astype(matmul_dtype)
    w3_c = w3.astype(matmul_dtype)

    grid = (n_pad // tb,)
    full = lambda shape: pl.BlockSpec(shape, lambda i: (0, 0))

    out_padded = pl.pallas_call(
        _mlp_kernel,
        out_shape=jax.ShapeDtypeStruct((n_pad, d_out_pad), jnp.float32),
        grid_spec=pltpu.PrefetchScalarGridSpec(
            num_scalar_prefetch=0,
            grid=grid,
            in_specs=[
                pl.BlockSpec((tb, d_in), lambda i: (i, 0)),   # x tile
                full((d_in, h1)), full((1, h1)),              # layer 1 (resident)
                full((h1, h2)), full((1, h2)),                # layer 2 (resident)
                full((h2, d_out_pad)), full((1, d_out_pad)),  # final layer
            ],
            out_specs=pl.BlockSpec((tb, d_out_pad), lambda i: (i, 0)),
        ),
        compiler_params=pltpu.CompilerParams(
            dimension_semantics=("parallel",),
            vmem_limit_bytes=32 * 1024 * 1024,
        ),
    )(x_c, w1_c, b1, w2_c, b2, w3_c, b3)

    return out_padded[:n, :d_out]


def init_params(key, input_dim, output_dim, hidden_dims):
    """Deterministic parameter init mirroring MLP.__init__ shapes.

    Weights ~ N(0, 1) (nn.init.normal_ default), biases ~ N(0, 1) (synthetic).
    Weights stored transposed relative to PyTorch: (in_features, out_features).
    """
    dims = [input_dim] + list(hidden_dims) + [output_dim]
    params = {}
    for idx in range(len(dims) - 1):
        key, kw, kb = jax.random.split(key, 3)
        params[f"w{idx + 1}"] = jax.random.normal(
            kw, (dims[idx], dims[idx + 1]), dtype=jnp.float32
        )
        params[f"b{idx + 1}"] = jax.random.normal(
            kb, (1, dims[idx + 1]), dtype=jnp.float32
        )
    return params


def _reference_forward(x, params, matmul_dtype=None):
    """Pure-JAX reference; optionally mirrors the kernel's operand cast."""
    cast = (lambda a: a) if matmul_dtype is None else (lambda a: a.astype(matmul_dtype))
    h = jnp.dot(cast(x), cast(params["w1"]),
                preferred_element_type=jnp.float32) + params["b1"]
    h = jax.nn.sigmoid(h)
    h = jnp.dot(cast(h), cast(params["w2"]),
                preferred_element_type=jnp.float32) + params["b2"]
    h = jax.nn.sigmoid(h)
    return jnp.dot(cast(h), cast(params["w3"]),
                   preferred_element_type=jnp.float32) + params["b3"]


if __name__ == "__main__":
    # REncoder(input_dim=4, output_dim=8, hidden_dims=[32, 32])
    input_dim, output_dim, hidden_dims = 4, 8, [32, 32]
    batch = 16

    key = jax.random.PRNGKey(0)
    key, kx = jax.random.split(key)
    x = jax.random.normal(kx, (batch, input_dim), dtype=jnp.float32)
    params = init_params(key, input_dim, output_dim, hidden_dims)

    # Full-precision path: exact parity with the f32 reference.
    out_f32 = jax.block_until_ready(
        r_encoder_forward(x, params, matmul_dtype=jnp.float32))
    ref_f32 = _reference_forward(x, params)
    assert out_f32.shape == (batch, output_dim)
    assert jnp.allclose(out_f32, ref_f32, atol=1e-5, rtol=1e-5)

    # Default bf16-matmul path (v6e/v7x MXU native): tight vs a bf16-matched
    # reference, loose vs the pure-f32 reference.
    out_bf16 = jax.block_until_ready(r_encoder_forward(x, params))
    ref_bf16 = _reference_forward(x, params, matmul_dtype=jnp.bfloat16)
    assert out_bf16.shape == (batch, output_dim)
    assert jnp.allclose(out_bf16, ref_bf16, atol=2e-3, rtol=2e-3)
    assert jnp.allclose(out_bf16, ref_f32, atol=2e-1, rtol=1e-1)

    print("KERNEL_OK")
</pallas_src>

<mosaic_0001>
module attributes {stable_mosaic.version = 11 : i64} {
  func.func @_mlp_kernel(%arg0: i32, %arg1: memref<16x4xf32, #tpu.memory_space<vmem>>, %arg2: memref<4x32xf32, #tpu.memory_space<vmem>>, %arg3: memref<1x32xf32, #tpu.memory_space<vmem>>, %arg4: memref<32x32xf32, #tpu.memory_space<vmem>>, %arg5: memref<1x32xf32, #tpu.memory_space<vmem>>, %arg6: memref<32x128xf32, #tpu.memory_space<vmem>>, %arg7: memref<1x128xf32, #tpu.memory_space<vmem>>, %arg8: memref<16x128xf32, #tpu.memory_space<vmem>>) attributes {dimension_semantics = [#tpu.dimension_semantics<parallel>], iteration_bounds = array<i64: 1>, scalar_prefetch = 0 : i64, scratch_operands = 0 : i64, tpu.core_type = #tpu.core_type<tc>, window_params = [{transform_indices = @transform_0, window_bounds = array<i64: 16, 4>}, {pipeline_mode = #tpu.pipeline_mode<synchronous>, transform_indices = @transform_1, window_bounds = array<i64: 4, 32>}, {pipeline_mode = #tpu.pipeline_mode<synchronous>, transform_indices = @transform_2, window_bounds = array<i64: 1, 32>}, {pipeline_mode = #tpu.pipeline_mode<synchronous>, transform_indices = @transform_3, window_bounds = array<i64: 32, 32>}, {pipeline_mode = #tpu.pipeline_mode<synchronous>, transform_indices = @transform_4, window_bounds = array<i64: 1, 32>}, {pipeline_mode = #tpu.pipeline_mode<synchronous>, transform_indices = @transform_5, window_bounds = array<i64: 32, 128>}, {pipeline_mode = #tpu.pipeline_mode<synchronous>, transform_indices = @transform_6, window_bounds = array<i64: 1, 128>}, {transform_indices = @transform_7, window_bounds = array<i64: 16, 128>}]} {
    %c0 = arith.constant 0 : index
    %c0_0 = arith.constant 0 : index
    %0 = vector.load %arg1[%c0, %c0_0] : memref<16x4xf32, #tpu.memory_space<vmem>>, vector<16x4xf32>
    %c0_1 = arith.constant 0 : index
    %c0_2 = arith.constant 0 : index
    %1 = vector.load %arg2[%c0_1, %c0_2] : memref<4x32xf32, #tpu.memory_space<vmem>>, vector<4x32xf32>
    %cst = arith.constant dense<0.000000e+00> : vector<16x32xf32>
    %2 = tpu.matmul %0, %1, %cst {dimension_numbers = #tpu.dot_dimension_numbers<[1], [0], [0], [1], [0, 0, 1, 1], [], []>} : vector<16x4xf32>, vector<4x32xf32>, vector<16x32xf32> -> vector<16x32xf32>
    %c0_3 = arith.constant 0 : index
    %c0_4 = arith.constant 0 : index
    %3 = vector.load %arg3[%c0_3, %c0_4] : memref<1x32xf32, #tpu.memory_space<vmem>>, vector<1x32xf32>
    %4 = vector.broadcast %3 : vector<1x32xf32> to vector<16x32xf32>
    %5 = arith.addf %2, %4 : vector<16x32xf32>
    %6 = arith.negf %5 : vector<16x32xf32>
    %7 = math.exp %6 : vector<16x32xf32>
    %cst_5 = arith.constant 1.000000e+00 : f32
    %8 = vector.broadcast %cst_5 : f32 to vector<16x32xf32>
    %9 = arith.addf %8, %7 : vector<16x32xf32>
    %10 = arith.divf %8, %9 : vector<16x32xf32>
    %c0_6 = arith.constant 0 : index
    %c0_7 = arith.constant 0 : index
    %11 = vector.load %arg4[%c0_6, %c0_7] : memref<32x32xf32, #tpu.memory_space<vmem>>, vector<32x32xf32>
    %cst_8 = arith.constant dense<0.000000e+00> : vector<16x32xf32>
    %12 = tpu.matmul %10, %11, %cst_8 {dimension_numbers = #tpu.dot_dimension_numbers<[1], [0], [0], [1], [0, 0, 1, 1], [], []>} : vector<16x32xf32>, vector<32x32xf32>, vector<16x32xf32> -> vector<16x32xf32>
    %c0_9 = arith.constant 0 : index
    %c0_10 = arith.constant 0 : index
    %13 = vector.load %arg5[%c0_9, %c0_10] : memref<1x32xf32, #tpu.memory_space<vmem>>, vector<1x32xf32>
    %14 = vector.broadcast %13 : vector<1x32xf32> to vector<16x32xf32>
    %15 = arith.addf %12, %14 : vector<16x32xf32>
    %16 = arith.negf %15 : vector<16x32xf32>
    %17 = math.exp %16 : vector<16x32xf32>
    %cst_11 = arith.constant 1.000000e+00 : f32
    %18 = vector.broadcast %cst_11 : f32 to vector<16x32xf32>
    %19 = arith.addf %18, %17 : vector<16x32xf32>
    %20 = arith.divf %18, %19 : vector<16x32xf32>
    %c0_12 = arith.constant 0 : index
    %c0_13 = arith.constant 0 : index
    %21 = vector.load %arg6[%c0_12, %c0_13] : memref<32x128xf32, #tpu.memory_space<vmem>>, vector<32x128xf32>
    %cst_14 = arith.constant dense<0.000000e+00> : vector<16x128xf32>
    %22 = tpu.matmul %20, %21, %cst_14 {dimension_numbers = #tpu.dot_dimension_numbers<[1], [0], [0], [1], [0, 0, 1, 1], [], []>} : vector<16x32xf32>, vector<32x128xf32>, vector<16x128xf32> -> vector<16x128xf32>
    %c0_15 = arith.constant 0 : index
    %c0_16 = arith.constant 0 : index
    %23 = vector.load %arg7[%c0_15, %c0_16] : memref<1x128xf32, #tpu.memory_space<vmem>>, vector<1x128xf32>
    %24 = vector.broadcast %23 : vector<1x128xf32> to vector<16x128xf32>
    %25 = arith.addf %22, %24 : vector<16x128xf32>
    %c0_17 = arith.constant 0 : index
    %c0_18 = arith.constant 0 : index
    %26 = vector.load %arg8[%c0_17, %c0_18] : memref<16x128xf32, #tpu.memory_space<vmem>>, vector<16x128xf32>
    tpu.vector_store %arg8[%c0_17, %c0_18], %25 {strides = array<i32>} : memref<16x128xf32, #tpu.memory_space<vmem>>, vector<16x128xf32>,
    return
  }
  func.func @transform_0(%arg0: i32) -> (i32, i32) {
    %c0_i32 = arith.constant 0 : i32
    %c0_i32_0 = arith.constant 0 : i32
    return %arg0, %c0_i32 : i32, i32
  }
  func.func @transform_1(%arg0: i32) -> (i32, i32) {
    %c0_i32 = arith.constant 0 : i32
    %c0_i32_0 = arith.constant 0 : i32
    %c0_i32_1 = arith.constant 0 : i32
    return %c0_i32, %c0_i32_0 : i32, i32
  }
  func.func @transform_2(%arg0: i32) -> (i32, i32) {
    %c0_i32 = arith.constant 0 : i32
    %c0_i32_0 = arith.constant 0 : i32
    %c0_i32_1 = arith.constant 0 : i32
    return %c0_i32, %c0_i32_0 : i32, i32
  }
  func.func @transform_3(%arg0: i32) -> (i32, i32) {
    %c0_i32 = arith.constant 0 : i32
    %c0_i32_0 = arith.constant 0 : i32
    %c0_i32_1 = arith.constant 0 : i32
    return %c0_i32, %c0_i32_0 : i32, i32
  }
  func.func @transform_4(%arg0: i32) -> (i32, i32) {
    %c0_i32 = arith.constant 0 : i32
    %c0_i32_0 = arith.constant 0 : i32
    %c0_i32_1 = arith.constant 0 : i32
    return %c0_i32, %c0_i32_0 : i32, i32
  }
  func.func @transform_5(%arg0: i32) -> (i32, i32) {
    %c0_i32 = arith.constant 0 : i32
    %c0_i32_0 = arith.constant 0 : i32
    %c0_i32_1 = arith.constant 0 : i32
    return %c0_i32, %c0_i32_0 : i32, i32
  }
  func.func @transform_6(%arg0: i32) -> (i32, i32) {
    %c0_i32 = arith.constant 0 : i32
    %c0_i32_0 = arith.constant 0 : i32
    %c0_i32_1 = arith.constant 0 : i32
    return %c0_i32, %c0_i32_0 : i32, i32
  }
  func.func @transform_7(%arg0: i32) -> (i32, i32) {
    %c0_i32 = arith.constant 0 : i32
    %c0_i32_0 = arith.constant 0 : i32
    return %arg0, %c0_i32 : i32, i32
  }
}

</mosaic_0001>

<bundles_post_ra>
// kernel: tpu_custom_call.1
= control target key start
LH: loop header
LB: loop body
LE: loop exit
PB: predicated region body
PF: predicated region fallthrough
CT: control target
= control target key end

     0   :  { %12 = vsyncpa [#allocation3], 0  ;;  %s613_s0 = inlined_call_operand.vmem [shape: f32[16,4], index: 0, kind: input, shape index: {}]   ;;  %s614_s1 = inlined_call_operand.vmem [shape: f32[4,32], index: 1, kind: input, shape index: {}]   ;;  %s615_s2 = inlined_call_operand.vmem [shape: f32[1,32], index: 2, kind: input, shape index: {}]   ;;  %s616_s3 = inlined_call_operand.hbm [shape: f32[32,32], index: 3, kind: input, shape index: {}]   ;;  %s617_s4 = inlined_call_operand.vmem [shape: f32[1,32], index: 4, kind: input, shape index: {}]   ;;  %s618_s5 = inlined_call_operand.vmem [shape: f32[32,128], index: 5, kind: input, shape index: {}]   ;;  %s619_s6 = inlined_call_operand.vmem [shape: f32[1,128], index: 6, kind: input, shape index: {}]   ;;  %s620_s7 = inlined_call_operand.hbm [shape: f32[16,128], index: 7, kind: output, shape index: {}]  }
   0x1   :  { %13 = vsyncpa [#allocation4], 0  ;;  %s505_s24 = smov [#allocation2]   ;;  %s457_s28 = scalar_lea.hbm %s616_s3, 512 }
   0x2   :  { %s25_s25 = sshll.u32 %s505_s24, 4  ;;  %p458_p0 = scmp.ne.s32.totalorder %s616_s3, %s457_s28  ;;  %s26_s25 = int_to_ptr.vmem [resolvable:$true] %s25_s25 }
   0x3   :  { %p461_p1 = scmp.lt.u32.totalorder %s457_s28, %s616_s3 }
   0x5   :  { %p463_p2 = pnand %p461_p1, %p458_p0 }
   0x7   :  { %466 = shalt.err (!%p463_p2)
}
   0x8   :  { %s467_s10 = scalar_lea.vmem %s26_s25, 512  ;;  %p472_p4 = scmp.lt.s32.totalorder %s26_s25, %s26_s25 }
   0x9   :  { %p468_p3 = scmp.ne.s32.totalorder %s26_s25, %s467_s10  ;;  %p473_p5 = scmp.lt.s32.totalorder %s467_s10, %s467_s10 }
   0xb   :  { %p474_p6 = por %p473_p5, %p472_p4 }
   0xd   :  { %p475_p7 = pnand %p474_p6, %p468_p3 }
   0xf   :  { %478 = shalt.err (!%p475_p7)
}
  0x10   :  { %s506_s11 = smov 128   ;;  %s507_s12 = smov 8  }
  0x11   :  { %31 = dma.hbm_to_vmem [thread:$0]  %s616_s3, 512, %s26_s25, [#allocation3], %s506_s11, %s506_s11, %s507_s12  }
  0x12   :  { %501 = dma.done.wait [#allocation3], 512  }
  0x13   :  { %502 = vsyncadd [#allocation3], 4294966784  ;;  %vm58_vm0 = vcmask 1043456   ;;  %vm51_vm1 = vcmask 31744   ;;  %v43_v0 = vld [vmem:[%s614_s1] sm:$0xf] }
  0x14   :  { %v41_v1 = vld [vmem:[%s613_s0] sm:$0xff]  ;;  %v42_v2 = vld [vmem:[%s613_s0 + $0x8] sm:$0xff]  ;;  %394 = vmatprep.subr.msk.mxu0 %vm58_vm0, %v43_v0  ;;  %v151_v5 = vld [vmem:[#allocation2 + $0x10] sm:$0xff]  ;;  %vm160_vm2 = vcmask 261120   ;;  %s508_s29 = smov [#allocation5]  }
  0x15   :  { %396 = vmatprep.mubr.msk.f32.mxu0 %vm51_vm1, %v41_v1  ;;  %395 = vmatpush3.msk.msra.mxu0 %vm58_vm0, %v43_v0  ;;  %v149_v3 = vld [vmem:[#allocation2] sm:$0xff]  ;;  %v150_v4 = vld [vmem:[#allocation2 + $0x8] sm:$0xff]  ;;  %v152_v7 = vld [vmem:[#allocation2 + $0x18] sm:$0xff]  ;;  %s353_s30 = sshll.u32 %s508_s29, 4  ;;  %s354_s30 = int_to_ptr.vmem [resolvable:$true] %s353_s30 }
  0x16   :  { %397 = vmatmul.mubr.msk.f32.vlgmr.msra.gmra.mrb[0].mxu0 %vm51_vm1, %v42_v2  ;;  %v421_v6 = vpack.c.bf16 %v150_v4, %v149_v3  ;;  %v425_v8 = vpack.c.bf16 %v152_v7, %v151_v5  ;;  %v365_v9 = vld [vmem:[%s615_s2] ss:$0 sm:$0xff]  ;;  %v255_v23 = vld [vmem:[%s618_s5 + $0x8] sm:$0xff]  ;;  %v256_v24 = vld [vmem:[%s618_s5 + $0x10] sm:$0xff]  ;;  %s479_s8 = scalar_lea.vmem %s354_s30, 256  ;;  %p484_p9 = scmp.lt.s32.totalorder %s354_s30, %s354_s30 }
  0x17   :  { %v254_v22 = vld [vmem:[%s618_s5] sm:$0xff]  ;;  %v257_v26 = vld [vmem:[%s618_s5 + $0x18] sm:$0xff]  ;;  %p480_p8 = scmp.ne.s32.totalorder %s354_s30, %s479_s8  ;;  %p485_p10 = scmp.lt.s32.totalorder %s479_s8, %s479_s8 }
  0x18   :  { %422 = vmatprep.subr.bf16.mxu1 %v421_v6  ;;  %v429_v25 = vpack.c.bf16 %v255_v23, %v254_v22  ;;  %v433_v27 = vpack.c.bf16 %v257_v26, %v256_v24  ;;  %v371_v28 = vld [vmem:[%s617_s4] ss:$0 sm:$0xff] }
  0x19   :  { %424 = vmatpush3.bf16.msra.mxu1 %v421_v6  ;;  %v376_v41 = vld [vmem:[%s619_s6] ss:$0 sm:$0xff]  ;;  %p486_p11 = por %p485_p10, %p484_p9 }
  0x1a   :  { %426 = vmatprep.subr.bf16.mxu1 %v425_v8  ;;  %430 = vmatprep.subr.bf16.mxu0 %v429_v25 }
  0x1b   :  { %432 = vmatpush3.bf16.msra.mxu0 %v429_v25  ;;  %p487_p12 = pnand %p486_p11, %p480_p8 }
  0x1c   :  { %434 = vmatprep.subr.bf16.mxu0 %v433_v27 }
  0x1d   :  { %428 = vmatpush3.bf16.msra.mxu1 %v425_v8 }
  0x1f   :  { %436 = vmatpush3.bf16.msra.mxu0 %v433_v27 }
  0xe9   :  { %v398_v10 = vpop.f32.mrb[0].mxu0 }
  0xea   :  { %v134_v11 = vadd.f32 %v398_v10, %v365_v9  ;;  %v128_v12 = vpop.f32.mrb[1].mxu0 }
  0xeb   :  { %v129_v13 = vadd.f32 %v365_v9, %v128_v12 }
  0xec   :  { %v370_v14 = vmul.f32 -1.442695, %v134_v11 }
  0xed   :  { %v369_v15 = vmul.f32 -1.442695, %v129_v13 }
  0xee   :  { %441 = vpow2.f32 %v370_v14 }
  0xef   :  { %443 = vpow2.f32 %v369_v15 }
  0xf8   :  { %v442_v16 = vpop.eup %441 }
  0xf9   :  { %v444_v17 = vpop.eup %443  ;;  %v144_v18 = vadd.f32 1.0, %v442_v16 }
  0xfa   :  { %v143_v19 = vadd.f32 1.0, %v444_v17 }
  0xfc   :  { %445 = vrcp.f32 %v143_v19 }
  0xfd   :  { %447 = vrcp.f32 %v144_v18 }
 0x106   :  { %v446_v20 = vpop.eup %445 }
 0x107   :  { %v448_v21 = vpop.eup %447  ;;  %407 = vmatprep.mubr.msk.f32.mxu1 %vm160_vm2, %v446_v20 }
 0x108   :  { %408 = vmatmul.mubr.msk.f32.vlgmr.msra.gmra.mrb[0].mxu1 %vm160_vm2, %v448_v21 }
 0x1db   :  { %v409_v29 = vpop.f32.mrb[0].mxu1 }
 0x1dc   :  { %v239_v30 = vadd.f32 %v409_v29, %v371_v28  ;;  %v233_v31 = vpop.f32.mrb[1].mxu1 }
 0x1dd   :  { %v234_v32 = vadd.f32 %v371_v28, %v233_v31 }
 0x1de   :  { %v375_v33 = vmul.f32 -1.442695, %v239_v30 }
 0x1df   :  { %v374_v34 = vmul.f32 -1.442695, %v234_v32 }
 0x1e0   :  { %449 = vpow2.f32 %v375_v33 }
 0x1e1   :  { %451 = vpow2.f32 %v374_v34 }
 0x1ea   :  { %v450_v35 = vpop.eup %449 }
 0x1eb   :  { %v452_v36 = vpop.eup %451  ;;  %v249_v37 = vadd.f32 1.0, %v450_v35 }
 0x1ec   :  { %v248_v38 = vadd.f32 1.0, %v452_v36 }
 0x1ee   :  { %453 = vrcp.f32 %v248_v38 }
 0x1ef   :  { %455 = vrcp.f32 %v249_v37 }
 0x1f8   :  { %v454_v39 = vpop.eup %453 }
 0x1f9   :  { %v456_v40 = vpop.eup %455  ;;  %418 = vmatprep.mubr.msk.f32.mxu0 %vm160_vm2, %v454_v39 }
 0x1fa   :  { %419 = vmatmul.mubr.msk.f32.vlgmr.msra.gmra.mrb[2].mxu0 %vm160_vm2, %v456_v40 }
 0x2cd   :  { %v420_v42 = vpop.f32.mrb[2].mxu0 }
 0x2ce   :  { %v343_v43 = vadd.f32 %v420_v42, %v376_v41  ;;  %v337_v44 = vpop.f32.mrb[3].mxu0 }
 0x2cf   :  { %v338_v45 = vadd.f32 %v376_v41, %v337_v44 }
 0x2d0   :  { %347 = vst [vmem:[#allocation5 + $0x8] sm:$0xff] %v343_v43 }
 0x2d1   :  { %346 = vst [vmem:[#allocation5] sm:$0xff] %v338_v45 }
 0x2d2   :  { %490 = shalt.err (!%p487_p12)
}
 0x2d3   :  { %s491_s6 = scalar_lea.hbm %s620_s7, 256 }
 0x2d4   :  { %p492_p13 = scmp.ne.s32.totalorder %s620_s7, %s491_s6  ;;  %p495_p0 = scmp.lt.u32.totalorder %s491_s6, %s620_s7 }
 0x2d6   :  { %p497_p1 = pnand %p495_p0, %p492_p13 }
 0x2d8   :  { %500 = shalt.err (!%p497_p1)
}
 0x2d9   :  { %359 = dma.vmem_to_hbm [thread:$0]  %s354_s30, 256, %s620_s7, [#allocation4], %s506_s11, %s506_s11, %s507_s12  }
 0x2da   :  { %503 = dma.done.wait [#allocation4], 256  }
 0x2db   :  { %504 = vsyncadd [#allocation4], 4294967040 }
 0x2dc   :  { %363 = vsyncpa [#allocation3], 1 }
 0x2dd   :  { %364 = vsyncpa [#allocation4], 1 }

</bundles_post_ra>
